<compile_context>
chip_gen: v7x
topology: tpu7x:2x2x1
jax: 0.10.0
libtpu: 0.0.40
codegen_flags: <defaults>
</compile_context>

<pallas_src>
import jax
import jax.numpy as jnp
from jax import lax
from jax.experimental import pallas as pl
from jax.experimental.pallas import tpu as pltpu  # noqa: F401  (TPU backend)

EPS = 1e-3


def _bn_kernel(x_ref, gamma_ref, beta_ref, o_ref):
    # x_ref: (M, C) lane-dense in VMEM; gamma/beta: (1, C) in VMEM.
    x = x_ref[...].astype(jnp.float32)
    m = x.shape[0]
    inv_m = jnp.float32(1.0 / m)

    # One-pass batch statistics: E[x], E[x^2] (f32 accumulation), reduced over
    # the sublane axis (cheap VPU adds), results land on the lane axis (1, C).
    s = jnp.sum(x, axis=0, keepdims=True)          # (1, C)
    sq = jnp.sum(x * x, axis=0, keepdims=True)     # (1, C)
    mean = s * inv_m
    # Clamp: E[x^2] - E[x]^2 can go slightly negative in f32 for
    # large-mean / low-variance channels.
    var = jnp.maximum(sq * inv_m - mean * mean, 0.0)   # biased (1/M) variance
    inv_std = lax.rsqrt(var + EPS)

    # Fold affine into one per-channel scale/shift so the apply is one FMA.
    gamma = gamma_ref[...].astype(jnp.float32)     # (1, C)
    beta = beta_ref[...].astype(jnp.float32)       # (1, C)
    scale = inv_std * gamma                        # (1, C)
    shift = beta - mean * scale                    # (1, C)

    # Sublane broadcast of (1, C) over (M, C) is free; lane-dense store.
    o_ref[...] = (x * scale + shift).astype(o_ref.dtype)


def batchnorm2d_pallas(x_nchw, gamma, beta):
    """x_nchw: (N, C, H, W); gamma, beta: (C,). Training-mode BN forward."""
    N, C, H, W = x_nchw.shape
    M = N * H * W

    # Channels-last, lane-dense slab (M, C). The transpose is a tiny XLA op
    # (~75 KB) that fuses when this wrapper lives inside a larger jit.
    x2d = jnp.transpose(x_nchw, (0, 2, 3, 1)).reshape(M, C)
    g2d = gamma.reshape(1, C)
    b2d = beta.reshape(1, C)

    out2d = pl.pallas_call(
        _bn_kernel,
        out_shape=jax.ShapeDtypeStruct((M, C), x_nchw.dtype),
        # Single full-array block, no grid: the whole tensor fits trivially in
        # VMEM, so no pipelining machinery is needed.
        in_specs=[
            pl.BlockSpec((M, C), lambda: (0, 0)),
            pl.BlockSpec((1, C), lambda: (0, 0)),
            pl.BlockSpec((1, C), lambda: (0, 0)),
        ],
        out_specs=pl.BlockSpec((M, C), lambda: (0, 0)),
    )(x2d, g2d, b2d)

    return jnp.transpose(out2d.reshape(N, H, W, C), (0, 3, 1, 2))


if __name__ == "__main__":
    key = jax.random.PRNGKey(0)
    kx, kg, kb = jax.random.split(key, 3)

    N, C, H, W = 1, 384, 7, 7  # matches the module's fixed shape
    x = jax.random.normal(kx, (N, C, H, W), dtype=jnp.float32)
    # Non-trivial affine parameters (deterministic) to exercise the full path.
    gamma = 1.0 + 0.1 * jax.random.normal(kg, (C,), dtype=jnp.float32)
    beta = 0.1 * jax.random.normal(kb, (C,), dtype=jnp.float32)

    bn = jax.jit(batchnorm2d_pallas)
    y = bn(x, gamma, beta)
    y = jax.block_until_ready(y)

    # Pure-JAX reference (PyTorch training-mode BN: biased variance, eps=1e-3).
    mean = jnp.mean(x, axis=(0, 2, 3), keepdims=True)
    var = jnp.mean((x - mean) ** 2, axis=(0, 2, 3), keepdims=True)
    ref = (x - mean) * lax.rsqrt(var + EPS) * gamma.reshape(1, C, 1, 1) \
        + beta.reshape(1, C, 1, 1)

    assert y.shape == (N, C, H, W)
    assert jnp.max(jnp.abs(y - ref)) < 2e-4

    print("KERNEL_OK")
</pallas_src>

<mosaic_0001>
module attributes {stable_mosaic.version = 11 : i64} {
  func.func @_bn_kernel(%arg0: memref<49x384xf32, #tpu.memory_space<vmem>>, %arg1: memref<1x384xf32, #tpu.memory_space<vmem>>, %arg2: memref<1x384xf32, #tpu.memory_space<vmem>>, %arg3: memref<49x384xf32, #tpu.memory_space<vmem>>) attributes {dimension_semantics = [], scalar_prefetch = 0 : i64, scratch_operands = 0 : i64, tpu.core_type = #tpu.core_type<tc>} {
    %c0 = arith.constant 0 : index
    %c0_0 = arith.constant 0 : index
    %0 = vector.load %arg0[%c0, %c0_0] : memref<49x384xf32, #tpu.memory_space<vmem>>, vector<49x384xf32>
    %cst = arith.constant dense<0.000000e+00> : vector<384xf32>
    %1 = vector.multi_reduction <add>, %0, %cst [0] : vector<49x384xf32> to vector<384xf32>
    %2 = vector.shape_cast %1 : vector<384xf32> to vector<1x384xf32>
    %3 = arith.mulf %0, %0 : vector<49x384xf32>
    %cst_1 = arith.constant dense<0.000000e+00> : vector<384xf32>
    %4 = vector.multi_reduction <add>, %3, %cst_1 [0] : vector<49x384xf32> to vector<384xf32>
    %5 = vector.shape_cast %4 : vector<384xf32> to vector<1x384xf32>
    %cst_2 = arith.constant 0.0204081628 : f32
    %6 = vector.broadcast %cst_2 : f32 to vector<1x384xf32>
    %7 = arith.mulf %2, %6 : vector<1x384xf32>
    %cst_3 = arith.constant 0.0204081628 : f32
    %8 = vector.broadcast %cst_3 : f32 to vector<1x384xf32>
    %9 = arith.mulf %5, %8 : vector<1x384xf32>
    %10 = arith.mulf %7, %7 : vector<1x384xf32>
    %11 = arith.subf %9, %10 : vector<1x384xf32>
    %cst_4 = arith.constant 0.000000e+00 : f32
    %12 = vector.broadcast %cst_4 : f32 to vector<1x384xf32>
    %13 = arith.maximumf %11, %12 : vector<1x384xf32>
    %cst_5 = arith.constant 1.000000e-03 : f32
    %14 = vector.broadcast %cst_5 : f32 to vector<1x384xf32>
    %15 = arith.addf %13, %14 : vector<1x384xf32>
    %16 = math.rsqrt %15 : vector<1x384xf32>
    %c0_6 = arith.constant 0 : index
    %c0_7 = arith.constant 0 : index
    %17 = vector.load %arg1[%c0_6, %c0_7] : memref<1x384xf32, #tpu.memory_space<vmem>>, vector<1x384xf32>
    %c0_8 = arith.constant 0 : index
    %c0_9 = arith.constant 0 : index
    %18 = vector.load %arg2[%c0_8, %c0_9] : memref<1x384xf32, #tpu.memory_space<vmem>>, vector<1x384xf32>
    %19 = arith.mulf %16, %17 : vector<1x384xf32>
    %20 = arith.mulf %7, %19 : vector<1x384xf32>
    %21 = arith.subf %18, %20 : vector<1x384xf32>
    %22 = vector.broadcast %19 : vector<1x384xf32> to vector<49x384xf32>
    %23 = arith.mulf %0, %22 : vector<49x384xf32>
    %24 = vector.broadcast %21 : vector<1x384xf32> to vector<49x384xf32>
    %25 = arith.addf %23, %24 : vector<49x384xf32>
    %c0_10 = arith.constant 0 : index
    %c0_11 = arith.constant 0 : index
    %26 = vector.load %arg3[%c0_10, %c0_11] : memref<49x384xf32, #tpu.memory_space<vmem>>, vector<49x384xf32>
    tpu.vector_store %arg3[%c0_10, %c0_11], %25 {strides = array<i32>} : memref<49x384xf32, #tpu.memory_space<vmem>>, vector<49x384xf32>,
    return
  }
}

</mosaic_0001>

<bundles_post_ra>
// kernel: batchnorm2d_pallas.1
= control target key start
LH: loop header
LB: loop body
LE: loop exit
PB: predicated region body
PF: predicated region fallthrough
CT: control target
= control target key end

     0   :  { %vm40_vm0 = vcmask 1040384   ;;  %s595_s0 = inlined_call_operand.vmem [shape: f32[49,384], index: 0, kind: input, shape index: {}]   ;;  %s596_s1 = inlined_call_operand.vmem [shape: f32[1,384], index: 1, kind: input, shape index: {}]   ;;  %s597_s2 = inlined_call_operand.vmem [shape: f32[1,384], index: 2, kind: input, shape index: {}]   ;;  %s598_s3 = inlined_call_operand.vmem [shape: f32[49,384], index: 3, kind: output, shape index: {}]  }
   0x1   :  { %v334_v0 = vld [vmem:[%s595_s0] sm:$0xff]  ;;  %v339_v1 = vld [vmem:[%s595_s0 + $0x8] sm:$0xff]  ;;  %v344_v2 = vld [vmem:[%s595_s0 + $0x10] sm:$0xff] }
   0x2   :  { %v349_v3 = vld [vmem:[%s595_s0 + $0x18] sm:$0xff]  ;;  %v354_v4 = vld [vmem:[%s595_s0 + $0x20] sm:$0xff]  ;;  %v359_v5 = vld [vmem:[%s595_s0 + $0x28] sm:$0xff]  ;;  %v75_v15 = vmul.f32 %v334_v0, %v334_v0  ;;  %v76_v16 = vmul.f32 %v339_v1, %v339_v1  ;;  %v77_v20 = vmul.f32 %v344_v2, %v344_v2 }
   0x3   :  { %v364_v6 = vld [vmem:[%s595_s0 + $0x30] sm:$0xff]  ;;  %v369_v7 = vld [vmem:[%s595_s0 + $0x38] sm:$0xff]  ;;  %v374_v8 = vld [vmem:[%s595_s0 + $0x40] sm:$0xff]  ;;  %v35_v9 = vadd.f32 %v349_v3, %v334_v0  ;;  %v49_v10 = vadd.f32 %v354_v4, %v339_v1  ;;  %v62_v11 = vadd.f32 %v359_v5, %v344_v2  ;;  %v78_v24 = vmul.f32 %v349_v3, %v349_v3 }
   0x4   :  { %v385_v12 = vld [vmem:[%s595_s0 + $0x48] sm:$0xff]  ;;  %v390_v13 = vld [vmem:[%s595_s0 + $0x50] sm:$0xff]  ;;  %v395_v14 = vld [vmem:[%s595_s0 + $0x58] sm:$0xff]  ;;  %v79_v25 = vmul.f32 %v354_v4, %v354_v4  ;;  %v80_v26 = vmul.f32 %v359_v5, %v359_v5  ;;  %v81_v27 = vmul.f32 %v364_v6, %v364_v6  ;;  %v82_v34 = vmul.f32 %v369_v7, %v369_v7 }
   0x5   :  { %v36_v17 = vadd.f32 %v35_v9, %v364_v6  ;;  %v50_v18 = vadd.f32 %v49_v10, %v369_v7  ;;  %v63_v19 = vadd.f32 %v62_v11, %v374_v8  ;;  %v409_v21 = vld [vmem:[%s595_s0 + $0x60] sm:$0xff]  ;;  %v414_v22 = vld [vmem:[%s595_s0 + $0x68] sm:$0xff]  ;;  %v419_v23 = vld [vmem:[%s595_s0 + $0x70] sm:$0xff]  ;;  %v83_v38 = vmul.f32 %v374_v8, %v374_v8 }
   0x6   :  { %v432_v28 = vld [vmem:[%s595_s0 + $0x90] sm:$0x1]  ;;  %v437_v29 = vld [vmem:[%s595_s0 + $0x98] sm:$0x1]  ;;  %v442_v30 = vld [vmem:[%s595_s0 + $0xa0] sm:$0x1]  ;;  %v84_v39 = vmul.f32 %v385_v12, %v385_v12  ;;  %v85_v40 = vmul.f32 %v390_v13, %v390_v13  ;;  %v86_v41 = vmul.f32 %v395_v14, %v395_v14  ;;  %v87_v45 = vmul.f32 %v409_v21, %v409_v21 }
   0x7   :  { %v37_v31 = vadd.f32 %v36_v17, %v385_v12  ;;  %v51_v32 = vadd.f32 %v50_v18, %v390_v13  ;;  %v64_v33 = vadd.f32 %v63_v19, %v395_v14  ;;  %v452_v35 = vld [vmem:[%s595_s0 + $0x78] sm:$0xff]  ;;  %v457_v36 = vld [vmem:[%s595_s0 + $0x80] sm:$0xff]  ;;  %v462_v37 = vld [vmem:[%s595_s0 + $0x88] sm:$0xff]  ;;  %v41_v46 = vsel %vm40_vm0, %v432_v28, 0.0 }
   0x8   :  { %v54_v47 = vsel %vm40_vm0, %v437_v29, 0.0  ;;  %v67_v48 = vsel %vm40_vm0, %v442_v30, 0.0  ;;  %v88_v49 = vmul.f32 %v414_v22, %v414_v22  ;;  %v89_v53 = vmul.f32 %v419_v23, %v419_v23 }
   0x9   :  { %v38_v42 = vadd.f32 %v37_v31, %v409_v21  ;;  %v52_v43 = vadd.f32 %v51_v32, %v414_v22  ;;  %v65_v44 = vadd.f32 %v64_v33, %v419_v23  ;;  %v90_v54 = vmul.f32 %v452_v35, %v452_v35 }
   0xa   :  { %v91_v55 = vmul.f32 %v457_v36, %v457_v36  ;;  %v96_v56 = vadd.f32 %v78_v24, %v75_v15  ;;  %v109_v57 = vadd.f32 %v79_v25, %v76_v16  ;;  %v122_v61 = vadd.f32 %v80_v26, %v77_v20 }
   0xb   :  { %v39_v50 = vadd.f32 %v38_v42, %v452_v35  ;;  %v53_v51 = vadd.f32 %v52_v43, %v457_v36  ;;  %v66_v52 = vadd.f32 %v65_v44, %v462_v37  ;;  %v93_v62 = vmul.f32 %v432_v28, %v432_v28 }
   0xc   :  { %v94_v63 = vmul.f32 %v437_v29, %v437_v29  ;;  %v97_v9 = vadd.f32 %v96_v56, %v81_v27  ;;  %v110_v10 = vadd.f32 %v109_v57, %v82_v34  ;;  %v123_v19 = vadd.f32 %v122_v61, %v83_v38 }
   0xd   :  { %v42_v58 = vadd.f32 %v41_v46, %v39_v50  ;;  %v55_v59 = vadd.f32 %v54_v47, %v53_v51  ;;  %v68_v60 = vadd.f32 %v67_v48, %v66_v52  ;;  %v92_v15 = vmul.f32 %v462_v37, %v462_v37 }
   0xe   :  { %v95_v16 = vmul.f32 %v442_v30, %v442_v30  ;;  %v98_v24 = vadd.f32 %v97_v9, %v84_v39  ;;  %v111_v20 = vadd.f32 %v110_v10, %v85_v40  ;;  %v124_v32 = vadd.f32 %v123_v19, %v86_v41 }
   0xf   :  { %v43_v11 = vrot.slane %v42_v58, 4  ;;  %v56_v17 = vrot.slane %v55_v59, 4  ;;  %v69_v18 = vrot.slane %v68_v60, 4  ;;  %v101_v27 = vsel %vm40_vm0, %v93_v62, 0.0 }
  0x10   :  { %v99_v33 = vadd.f32 %v98_v24, %v87_v45  ;;  %v112_v34 = vadd.f32 %v111_v20, %v88_v49  ;;  %v114_v42 = vsel %vm40_vm0, %v94_v63, 0.0  ;;  %v125_v46 = vadd.f32 %v124_v32, %v89_v53 }
  0x11   :  { %v44_v25 = vadd.f32 %v43_v11, %v42_v58  ;;  %v57_v26 = vadd.f32 %v56_v17, %v55_v59  ;;  %v70_v31 = vadd.f32 %v69_v18, %v68_v60  ;;  %v127_v50 = vsel %vm40_vm0, %v95_v16, 0.0 }
  0x12   :  { %v100_v47 = vadd.f32 %v99_v33, %v90_v54  ;;  %v113_v48 = vadd.f32 %v112_v34, %v91_v55  ;;  %v126_v52 = vadd.f32 %v125_v46, %v92_v15 }
  0x13   :  { %v45_v43 = vrot.slane %v44_v25, 2  ;;  %v58_v38 = vrot.slane %v57_v26, 2  ;;  %v71_v44 = vrot.slane %v70_v31, 2 }
  0x14   :  { %v102_v56 = vadd.f32 %v101_v27, %v100_v47  ;;  %v115_v41 = vadd.f32 %v114_v42, %v113_v48  ;;  %v128_v49 = vadd.f32 %v127_v50, %v126_v52 }
  0x15   :  { %v46_v39 = vadd.f32 %v45_v43, %v44_v25  ;;  %v59_v40 = vadd.f32 %v58_v38, %v57_v26  ;;  %v72_v51 = vadd.f32 %v71_v44, %v70_v31 }
  0x16   :  { %v103_v59 = vrot.slane %v102_v56, 4  ;;  %v116_v60 = vrot.slane %v115_v41, 4  ;;  %v129_v61 = vrot.slane %v128_v49, 4 }
  0x17   :  { %v47_v45 = vrot.slane %v46_v39, 1  ;;  %v60_v57 = vrot.slane %v59_v40, 1  ;;  %v73_v58 = vrot.slane %v72_v51, 1 }
  0x18   :  { %v104_v53 = vadd.f32 %v103_v59, %v102_v56  ;;  %v117_v54 = vadd.f32 %v116_v60, %v115_v41  ;;  %v130_v9 = vadd.f32 %v129_v61, %v128_v49  ;;  %v156_v49 = vld [vmem:[%s596_s1] sm:$0x7]  ;;  %v310_v61 = vmov 1966171168  }
  0x19   :  { %v48_v62 = vadd.f32 %v47_v45, %v46_v39  ;;  %v61_v63 = vadd.f32 %v60_v57, %v59_v40  ;;  %v74_v55 = vadd.f32 %v73_v58, %v72_v51  ;;  %v159_v39 = vlaneseq }
  0x1a   :  { %v105_v10 = vrot.slane %v104_v53, 2  ;;  %v118_v11 = vrot.slane %v117_v54, 2  ;;  %v131_v17 = vrot.slane %v130_v9, 2 }
  0x1b   :  { %v135_v15 = vmul.f32 0.020408163, %v48_v62  ;;  %v136_v16 = vmul.f32 0.020408163, %v61_v63  ;;  %v137_v20 = vmul.f32 0.020408163, %v74_v55  ;;  %v185_v62 = vunpack.c.l.s4 %v310_v61 }
  0x1c   :  { %v106_v18 = vadd.f32 %v105_v10, %v104_v53  ;;  %v119_v19 = vadd.f32 %v118_v11, %v117_v54  ;;  %v132_v24 = vadd.f32 %v131_v17, %v130_v9  ;;  %v160_v57 = vshrl.u32 %v159_v39, 7 }
  0x1d   :  { %v141_v27 = vmul.f32 %v135_v15, %v135_v15  ;;  %v142_v34 = vmul.f32 %v136_v16, %v136_v16  ;;  %v143_v43 = vmul.f32 %v137_v20, %v137_v20  ;;  %v186_v55 = vunpack.c.0.s8 %v185_v62 }
  0x1e   :  { %v107_v25 = vrot.slane %v106_v18, 1  ;;  %v120_v26 = vrot.slane %v119_v19, 1  ;;  %v133_v31 = vrot.slane %v132_v24, 1  ;;  %v161_v58 = vsub.s32 0, %v160_v57 }
  0x1f   :  { %v165_v59 = vsub.s32 1, %v160_v57  ;;  %v169_v60 = vsub.s32 2, %v160_v57 }
  0x20   :  { %v108_v32 = vadd.f32 %v107_v25, %v106_v18  ;;  %v121_v33 = vadd.f32 %v120_v26, %v119_v19  ;;  %v134_v42 = vadd.f32 %v133_v31, %v132_v24  ;;  %v162_v63 = vrot.slane %v156_v49, %v161_v58 }
  0x21   :  { %v166_v53 = vrot.slane %v156_v49, %v165_v59  ;;  %v170_v54 = vrot.slane %v156_v49, %v169_v60  ;;  %v189_v25 = vsub.s32 %v186_v55, %v160_v57 }
  0x22   :  { %v138_v38 = vmul.f32 0.020408163, %v108_v32  ;;  %v139_v44 = vmul.f32 0.020408163, %v121_v33  ;;  %v140_v46 = vmul.f32 0.020408163, %v134_v42 }
  0x24   :  { %v144_v47 = vsub.f32 %v138_v38, %v141_v27  ;;  %v145_v48 = vsub.f32 %v139_v44, %v142_v34  ;;  %v146_v50 = vsub.f32 %v140_v46, %v143_v43  ;;  %v157_v44 = vld [vmem:[%s597_s2] sm:$0x7] }
  0x26   :  { %v147_v40 = vmax.f32 %v144_v47, 0.0  ;;  %v148_v51 = vmax.f32 %v145_v48, 0.0  ;;  %v149_v52 = vmax.f32 %v146_v50, 0.0 }
  0x28   :  { %v150_v56 = vadd.f32 0.001, %v147_v40  ;;  %v151_v41 = vadd.f32 0.001, %v148_v51  ;;  %v152_v45 = vadd.f32 0.001, %v149_v52 }
  0x2a   :  { %304 = vrsqrt.f32 %v150_v56 }
  0x2b   :  { %306 = vrsqrt.f32 %v151_v41 }
  0x2c   :  { %308 = vrsqrt.f32 %v152_v45 }
  0x34   :  { %v305_v9 = vpop.eup %304 }
  0x35   :  { %v307_v10 = vpop.eup %306  ;;  %v174_v11 = vmul.f32 %v305_v9, %v162_v63 }
  0x36   :  { %v309_v17 = vpop.eup %308  ;;  %v175_v18 = vmul.f32 %v307_v10, %v166_v53 }
  0x37   :  { %v176_v19 = vmul.f32 %v309_v17, %v170_v54  ;;  %v177_v24 = vmul.f32 %v174_v11, %v135_v15  ;;  %v211_v27 = vrot.slane %v174_v11, %v161_v58 }
  0x38   :  { %v178_v26 = vmul.f32 %v175_v18, %v136_v16  ;;  %v215_v42 = vrot.slane %v175_v18, %v161_v58 }
  0x39   :  { %v179_v31 = vmul.f32 %v176_v19, %v137_v20  ;;  %v219_v43 = vrot.slane %v176_v19, %v161_v58  ;;  %v220_v46 = vmul.f32 %v211_v27, %v334_v0  ;;  %v223_v47 = vmul.f32 %v211_v27, %v349_v3 }
  0x3a   :  { %v183_v32 = vcombine.low %v177_v24, %v178_v26  ;;  %v221_v15 = vmul.f32 %v215_v42, %v339_v1  ;;  %v224_v16 = vmul.f32 %v215_v42, %v354_v4  ;;  %v226_v20 = vmul.f32 %v211_v27, %v364_v6 }
  0x3b   :  { %v197_v33 = vrot.slane %v179_v31, %v189_v25  ;;  %v222_v50 = vmul.f32 %v219_v43, %v344_v2  ;;  %v225_v39 = vmul.f32 %v219_v43, %v359_v5  ;;  %v227_v40 = vmul.f32 %v215_v42, %v369_v7 }
  0x3c   :  { %v190_v34 = vrot.slane %v183_v32, %v189_v25  ;;  %v228_v51 = vmul.f32 %v219_v43, %v374_v8  ;;  %v229_v0 = vmul.f32 %v211_v27, %v385_v12  ;;  %v230_v3 = vmul.f32 %v215_v42, %v390_v13 }
  0x3d   :  { %v231_v56 = vmul.f32 %v219_v43, %v395_v14  ;;  %v232_v1 = vmul.f32 %v211_v27, %v409_v21  ;;  %v233_v4 = vmul.f32 %v215_v42, %v414_v22  ;;  %v234_v6 = vmul.f32 %v219_v43, %v419_v23 }
  0x3e   :  { %v198_v38 = vcombine.low %v190_v34, %v197_v33  ;;  %v235_v2 = vmul.f32 %v211_v27, %v452_v35  ;;  %v236_v8 = vmul.f32 %v215_v42, %v457_v36  ;;  %v237_v45 = vmul.f32 %v219_v43, %v462_v37 }
  0x3f   :  { %v238_v12 = vmul.f32 %v211_v27, %v432_v28  ;;  %v239_v13 = vmul.f32 %v215_v42, %v437_v29  ;;  %v240_v14 = vmul.f32 %v219_v43, %v442_v30 }
  0x40   :  { %v205_v48 = vrot.slane %v198_v38, %v189_v25 }
  0x42   :  { %v207_v52 = vsub.f32 %v157_v44, %v205_v48 }
  0x44   :  { %v245_v5 = vrot.slane %v207_v52, %v161_v58  ;;  %v249_v41 = vrot.slane %v207_v52, %v165_v59  ;;  %v253_v7 = vrot.slane %v207_v52, %v169_v60 }
  0x46   :  { %v257_v21 = vadd.f32 %v245_v5, %v220_v46  ;;  %v258_v57 = vadd.f32 %v249_v41, %v221_v15  ;;  %v259_v22 = vadd.f32 %v253_v7, %v222_v50  ;;  %v260_v49 = vadd.f32 %v245_v5, %v223_v47 }
  0x47   :  { %v261_v23 = vadd.f32 %v249_v41, %v224_v16  ;;  %v262_v61 = vadd.f32 %v253_v7, %v225_v39  ;;  %v263_v35 = vadd.f32 %v245_v5, %v226_v20  ;;  %v264_v58 = vadd.f32 %v249_v41, %v227_v40 }
  0x48   :  { %278 = vst [vmem:[%s598_s3] sm:$0xff] %v257_v21  ;;  %279 = vst [vmem:[%s598_s3 + $0x8] sm:$0xff] %v258_v57  ;;  %v265_v28 = vadd.f32 %v253_v7, %v228_v51  ;;  %v266_v29 = vadd.f32 %v245_v5, %v229_v0  ;;  %v267_v30 = vadd.f32 %v249_v41, %v230_v3 }
  0x49   :  { %280 = vst [vmem:[%s598_s3 + $0x10] sm:$0xff] %v259_v22  ;;  %281 = vst [vmem:[%s598_s3 + $0x18] sm:$0xff] %v260_v49  ;;  %v268_v36 = vadd.f32 %v253_v7, %v231_v56  ;;  %v269_v37 = vadd.f32 %v245_v5, %v232_v1  ;;  %v270_v59 = vadd.f32 %v249_v41, %v233_v4 }
  0x4a   :  { %282 = vst [vmem:[%s598_s3 + $0x20] sm:$0xff] %v261_v23  ;;  %283 = vst [vmem:[%s598_s3 + $0x28] sm:$0xff] %v262_v61  ;;  %v271_v60 = vadd.f32 %v253_v7, %v234_v6  ;;  %v272_v62 = vadd.f32 %v245_v5, %v235_v2  ;;  %v273_v63 = vadd.f32 %v249_v41, %v236_v8 }
  0x4b   :  { %284 = vst [vmem:[%s598_s3 + $0x30] sm:$0xff] %v263_v35  ;;  %285 = vst [vmem:[%s598_s3 + $0x38] sm:$0xff] %v264_v58  ;;  %v274_v53 = vadd.f32 %v253_v7, %v237_v45  ;;  %v275_v54 = vadd.f32 %v245_v5, %v238_v12  ;;  %v276_v55 = vadd.f32 %v249_v41, %v239_v13 }
  0x4c   :  { %286 = vst [vmem:[%s598_s3 + $0x40] sm:$0xff] %v265_v28  ;;  %287 = vst [vmem:[%s598_s3 + $0x48] sm:$0xff] %v266_v29  ;;  %v277_v9 = vadd.f32 %v253_v7, %v240_v14 }
  0x4d   :  { %288 = vst [vmem:[%s598_s3 + $0x50] sm:$0xff] %v267_v30  ;;  %289 = vst [vmem:[%s598_s3 + $0x58] sm:$0xff] %v268_v36 }
  0x4e   :  { %290 = vst [vmem:[%s598_s3 + $0x60] sm:$0xff] %v269_v37  ;;  %291 = vst [vmem:[%s598_s3 + $0x68] sm:$0xff] %v270_v59 }
  0x4f   :  { %292 = vst [vmem:[%s598_s3 + $0x70] sm:$0xff] %v271_v60  ;;  %293 = vst [vmem:[%s598_s3 + $0x78] sm:$0xff] %v272_v62 }
  0x50   :  { %294 = vst [vmem:[%s598_s3 + $0x80] sm:$0xff] %v273_v63  ;;  %295 = vst [vmem:[%s598_s3 + $0x88] sm:$0xff] %v274_v53 }
  0x51   :  { %296 = vst [vmem:[%s598_s3 + $0x90] sm:$0x1] %v275_v54  ;;  %297 = vst [vmem:[%s598_s3 + $0x98] sm:$0x1] %v276_v55 }
  0x52   :  { %298 = vst [vmem:[%s598_s3 + $0xa0] sm:$0x1] %v277_v9 }

</bundles_post_ra>
